<compile_context>
chip_gen: v6e
topology: v6e:2x2x1
jax: 0.10.0
libtpu: 0.0.40
codegen_flags: <defaults>
</compile_context>

<pallas_src>
import jax
import jax.numpy as jnp
from jax import lax
from jax.experimental import pallas as pl
from jax.experimental.pallas import tpu as pltpu

CN_ACTIVE = True             # 'CN_active'
RESIDUAL_ACTIVE = True       # 'residual_connections_active'
NUM_BLOCKS = 12
BN_EPS = 1e-5                # nn.BatchNorm2d default
IN_EPS = 1e-3                # LTFGC_CN uses InstanceNorm2d(eps=0.001)
MATMUL_DTYPE = jnp.bfloat16  # MXU-native matmul dtype; accumulation stays f32


# --------------------------------- kernel ------------------------------------

def make_ltfgc_kernel(cn_active: bool, residual_active: bool):
    """Build the fused kernel. CN path takes no conv biases (they cancel under IN)."""

    def conv_norm_relu(h, Bs, Ns, D, w, b, gamma, beta):
        # 1x1 conv as bf16 MXU matmul, f32 accumulation. N % 8 == 0 makes the reshape
        # layout-preserving (no VMEM copy).
        y = jnp.dot(h.reshape(Bs * Ns, D).astype(MATMUL_DTYPE), w,
                    preferred_element_type=jnp.float32).reshape(Bs, Ns, D)
        if cn_active:
            # Conv bias cancels exactly under InstanceNorm -> never added.
            # Fused IN(eps=IN_EPS) + training-mode BN(eps=BN_EPS): one-pass per-(b,d)
            # stats over the point axis, then a tiny (1,1,D) pooled-variance reduce.
            m1 = jnp.mean(y, axis=1, keepdims=True)                 # (B, 1, D)
            m2 = jnp.mean(y * y, axis=1, keepdims=True)             # (B, 1, D)
            var = jnp.maximum(m2 - m1 * m1, 0.0)
            inv_in = lax.rsqrt(var + IN_EPS)                        # (B, 1, D)
            pooled = jnp.mean(var * (inv_in * inv_in), axis=0, keepdims=True)  # (1,1,D)
            scale = gamma * inv_in * lax.rsqrt(pooled + BN_EPS)     # (B, 1, D)
            shift = beta - m1 * scale                               # (B, 1, D)
            y = y * scale + shift                                   # 2-op affine apply
        else:
            # plain training-mode BatchNorm2d (bias is required on this path)
            y = y + b
            mu = jnp.mean(y, axis=(0, 1), keepdims=True)
            m2 = jnp.mean(y * y, axis=(0, 1), keepdims=True)
            var = jnp.maximum(m2 - mu * mu, 0.0)
            scale = gamma * lax.rsqrt(var + BN_EPS)
            shift = beta - mu * scale
            y = y * scale + shift
        return jnp.maximum(y, 0.0)

    def kernel(*refs):
        if cn_active:
            (x_ref, wf_ref, bf_ref,
             w1_ref, g1_ref, be1_ref,
             w2_ref, g2_ref, be2_ref,
             wl_ref, bl_ref, out_ref, h_ref) = refs
            b1 = b2 = None
        else:
            (x_ref, wf_ref, bf_ref,
             w1_ref, b1_ref, g1_ref, be1_ref,
             w2_ref, b2_ref, g2_ref, be2_ref,
             wl_ref, bl_ref, out_ref, h_ref) = refs
            b1, b2 = b1_ref[0], b2_ref[0]

        i = pl.program_id(0)

        # ---- prologue (block 0): fused Layer_1, Conv2d(1, d, (1, w)) == (W -> D) matmul
        @pl.when(i == 0)
        def _():
            x = x_ref[...]                                          # (B, N, W) f32
            Bs, Ns, Wd = x.shape
            h0 = jnp.dot(x.reshape(Bs * Ns, Wd).astype(MATMUL_DTYPE), wf_ref[...],
                         preferred_element_type=jnp.float32)
            h_ref[...] = h0.reshape(Bs, Ns, -1) + bf_ref[...]       # Layer_1 bias kept

        h_in = h_ref[...]                                           # (B, N, D) f32 (VMEM)
        Bs, Ns, D = h_in.shape

        h = conv_norm_relu(h_in, Bs, Ns, D, w1_ref[0], b1, g1_ref[0], be1_ref[0])
        h = conv_norm_relu(h, Bs, Ns, D, w2_ref[0], b2, g2_ref[0], be2_ref[0])
        if residual_active:
            h = h + h_in                                            # d_in == d_out
        h_ref[...] = h

        # ---- epilogue (last block): fused Conv2d(d, 1, 1x1) + reshape(-1, n) ----
        @pl.when(i == pl.num_programs(0) - 1)
        def _():
            out_ref[...] = jnp.sum(h * wl_ref[...], axis=-1) + bl_ref[0]   # (B, N)

    return kernel


# --------------------------------- wrapper -----------------------------------

def ltfgc_forward(x_nchw, params):
    B, C, N, W = x_nchw.shape
    assert C == 1
    x = x_nchw[:, 0]                                                # (B, N, W)
    D = params["w_first"].shape[1]

    # bf16 weights for the MXU matmuls (f32 accumulation inside the kernel).
    wf = params["w_first"].astype(MATMUL_DTYPE)
    w1s = params["w1s"].astype(MATMUL_DTYPE)
    w2s = params["w2s"].astype(MATMUL_DTYPE)

    const3 = lambda i: (0, 0, 0)
    const2 = lambda i: (0, 0)
    step3 = lambda i: (i, 0, 0)

    per_step_w = pl.BlockSpec((1, D, D), step3)                     # (D,D) slice of block i
    per_step_v = pl.BlockSpec((1, 1, D), step3)                     # (1,D) slice of block i

    # --- VMEM budget: resident scratch + live conv/norm temporaries + double-buffered
    #     per-step weight slices + input/output blocks + resident first/last weights.
    act = B * N * D * 4                                             # carried feature scratch
    temps = 4 * act                                                 # y, y*y, affine, relu (upper bound)
    per_step_bytes = 2 * (2 * D * D * 2 + 4 * D * 4)                # 2 bufs x (2 conv wts bf16 + 4 affine f32)
    io_blocks = 2 * (B * N * W * 4 + B * N * 4)                     # x + output blocks
    resident_w = W * D * 2 + 3 * D * 4 + 4                          # w_first(bf16), b_first, w_last, b_last
    vmem_limit = act + temps + per_step_bytes + io_blocks + resident_w + (4 << 20)
    try:
        cap = int(pltpu.get_tpu_info().vmem_capacity_bytes)         # chip-aware (v7x = 64 MiB)
    except Exception:
        cap = 64 << 20                                              # conservative fallback
    vmem_limit = int(min(max(vmem_limit, 16 << 20), cap - (8 << 20)))

    if CN_ACTIVE:
        in_specs = [
            pl.BlockSpec((B, N, W), const3),                        # x (only read at i==0)
            pl.BlockSpec((W, D), const2),                           # w_first (bf16)
            pl.BlockSpec((1, D), const2),                           # b_first
            per_step_w, per_step_v, per_step_v,                     # w1, gamma1, beta1 (per step)
            per_step_w, per_step_v, per_step_v,                     # w2, gamma2, beta2 (per step)
            pl.BlockSpec((1, D), const2),                           # w_last
            pl.BlockSpec(memory_space=pltpu.MemorySpace.SMEM),      # b_last scalar
        ]
        args = (x, wf, params["b_first"],
                w1s, params["g1s"], params["beta1s"],
                w2s, params["g2s"], params["beta2s"],
                params["w_last"], params["b_last"])
    else:
        in_specs = [
            pl.BlockSpec((B, N, W), const3),
            pl.BlockSpec((W, D), const2),
            pl.BlockSpec((1, D), const2),
            per_step_w, per_step_v, per_step_v, per_step_v,
            per_step_w, per_step_v, per_step_v, per_step_v,
            pl.BlockSpec((1, D), const2),
            pl.BlockSpec(memory_space=pltpu.MemorySpace.SMEM),
        ]
        args = (x, wf, params["b_first"],
                w1s, params["b1s"], params["g1s"], params["beta1s"],
                w2s, params["b2s"], params["g2s"], params["beta2s"],
                params["w_last"], params["b_last"])

    out = pl.pallas_call(
        make_ltfgc_kernel(CN_ACTIVE, RESIDUAL_ACTIVE),
        out_shape=jax.ShapeDtypeStruct((B, N), jnp.float32),
        grid=(NUM_BLOCKS,),
        in_specs=in_specs,
        out_specs=pl.BlockSpec((B, N), const2),
        scratch_shapes=[pltpu.VMEM((B, N, D), jnp.float32)],        # carried feature map
        compiler_params=pltpu.CompilerParams(
            dimension_semantics=("arbitrary",),
            vmem_limit_bytes=vmem_limit),
    )(*args)

    # torch.reshape(out, (-1, n)) with out (B, 1, n, 1) -> (B, n); already (B, n) here.
    return [out]


# --------------------------- pure-JAX reference ------------------------------

def ltfgc_reference(x_nchw, params):
    """Literal PyTorch semantics (unfused IN then training-mode BN, with conv biases),
    using the same bf16 matmul casts as the kernel."""
    B, C, N, W = x_nchw.shape
    x = x_nchw[:, 0]
    wf = params["w_first"].astype(MATMUL_DTYPE)
    h = jnp.dot(x.astype(MATMUL_DTYPE).reshape(B * N, W), wf,
                preferred_element_type=jnp.float32).reshape(B, N, -1) + params["b_first"]
    D = h.shape[-1]
    for blk in range(NUM_BLOCKS):
        h_in = h
        for conv in range(2):
            w = (params["w1s"][blk] if conv == 0 else params["w2s"][blk]).astype(MATMUL_DTYPE)
            b = params["b1s"][blk] if conv == 0 else params["b2s"][blk]
            g = params["g1s"][blk] if conv == 0 else params["g2s"][blk]
            be = params["beta1s"][blk] if conv == 0 else params["beta2s"][blk]
            y = jnp.dot(h.reshape(B * N, D).astype(MATMUL_DTYPE), w,
                        preferred_element_type=jnp.float32).reshape(B, N, D) + b
            if CN_ACTIVE:
                m = jnp.mean(y, axis=1, keepdims=True)
                v = jnp.mean((y - m) ** 2, axis=1, keepdims=True)
                y = (y - m) / jnp.sqrt(v + IN_EPS)
            mu = jnp.mean(y, axis=(0, 1), keepdims=True)
            var = jnp.mean((y - mu) ** 2, axis=(0, 1), keepdims=True)
            y = g * (y - mu) / jnp.sqrt(var + BN_EPS) + be
            h = jnp.maximum(y, 0.0)
        if RESIDUAL_ACTIVE:
            h = h + h_in
    return jnp.sum(h * params["w_last"], axis=-1) + params["b_last"][0]


# --------------------------- deterministic params ----------------------------

def init_params(key, w, d):
    ks = jax.random.split(key, 8)

    def u(k, shape, fan_in):
        bound = 1.0 / jnp.sqrt(jnp.float32(fan_in))
        return jax.random.uniform(k, shape, jnp.float32, -bound, bound)

    # conv weights stored as (in, out) so y = x @ w; biases/affine params as (..., 1, d)
    return dict(
        w_first=u(ks[0], (w, d), w),                        # Conv2d(1, d, (1, w)) weight^T
        b_first=u(ks[1], (1, d), w),
        w1s=u(ks[2], (NUM_BLOCKS, d, d), d),                # Conv2d_1 of each block
        b1s=u(ks[3], (NUM_BLOCKS, 1, d), d),                # cancels under IN (ref only)
        g1s=jnp.ones((NUM_BLOCKS, 1, d), jnp.float32),      # BatchNorm default gamma=1
        beta1s=jnp.zeros((NUM_BLOCKS, 1, d), jnp.float32),  # BatchNorm default beta=0
        w2s=u(ks[4], (NUM_BLOCKS, d, d), d),                # Conv2d_2 of each block
        b2s=u(ks[5], (NUM_BLOCKS, 1, d), d),                # cancels under IN (ref only)
        g2s=jnp.ones((NUM_BLOCKS, 1, d), jnp.float32),
        beta2s=jnp.zeros((NUM_BLOCKS, 1, d), jnp.float32),
        w_last=u(ks[6], (1, d), d),                         # Conv2d(d, 1, 1x1) weight
        b_last=u(ks[7], (1,), d),                           # scalar bias (SMEM)
    )


if __name__ == "__main__":
    n, model_width, inner_dim = 16, 4, 32       # n % 8 == 0 -> layout-preserving reshapes
    batch = 2

    key = jax.random.PRNGKey(0)
    kx, kp = jax.random.split(key)
    x = jax.random.normal(kx, (batch, 1, n, model_width), jnp.float32)  # NCHW, C=1
    params = init_params(kp, model_width, inner_dim)

    out = ltfgc_forward(x, params)
    jax.block_until_ready(out)
    assert out[0].shape == (batch, n) and out[0].dtype == jnp.float32

    ref = ltfgc_reference(x, params)
    ref_scale = max(1.0, float(jnp.max(jnp.abs(ref))))
    max_err = float(jnp.max(jnp.abs(out[0] - ref)))
    assert max_err < 1e-2 * ref_scale, f"max abs error vs reference: {max_err}"
    print("KERNEL_OK")
</pallas_src>

<mosaic_0001>
module attributes {stable_mosaic.version = 11 : i64} {
  func.func @kernel(%arg0: i32, %arg1: memref<2x16x4xf32, #tpu.memory_space<vmem>>, %arg2: memref<4x32xbf16, #tpu.memory_space<vmem>>, %arg3: memref<1x32xf32, #tpu.memory_space<vmem>>, %arg4: memref<1x32x32xbf16, #tpu.memory_space<vmem>>, %arg5: memref<1x1x32xf32, #tpu.memory_space<vmem>>, %arg6: memref<1x1x32xf32, #tpu.memory_space<vmem>>, %arg7: memref<1x32x32xbf16, #tpu.memory_space<vmem>>, %arg8: memref<1x1x32xf32, #tpu.memory_space<vmem>>, %arg9: memref<1x1x32xf32, #tpu.memory_space<vmem>>, %arg10: memref<1x32xf32, #tpu.memory_space<vmem>>, %arg11: memref<1xf32, #tpu.memory_space<smem>>, %arg12: memref<2x16xf32, #tpu.memory_space<vmem>>, %arg13: memref<2x16x32xf32, #tpu.memory_space<vmem>>) attributes {dimension_semantics = [#tpu.dimension_semantics<arbitrary>], iteration_bounds = array<i64: 12>, scalar_prefetch = 0 : i64, scratch_operands = 1 : i64, tpu.core_type = #tpu.core_type<tc>, window_params = [{pipeline_mode = #tpu.pipeline_mode<synchronous>, transform_indices = @transform_0, window_bounds = array<i64: 2, 16, 4>}, {pipeline_mode = #tpu.pipeline_mode<synchronous>, transform_indices = @transform_1, window_bounds = array<i64: 4, 32>}, {pipeline_mode = #tpu.pipeline_mode<synchronous>, transform_indices = @transform_2, window_bounds = array<i64: 1, 32>}, {transform_indices = @transform_3, window_bounds = array<i64: 1, 32, 32>}, {transform_indices = @transform_4, window_bounds = array<i64: 1, 1, 32>}, {transform_indices = @transform_5, window_bounds = array<i64: 1, 1, 32>}, {transform_indices = @transform_6, window_bounds = array<i64: 1, 32, 32>}, {transform_indices = @transform_7, window_bounds = array<i64: 1, 1, 32>}, {transform_indices = @transform_8, window_bounds = array<i64: 1, 1, 32>}, {pipeline_mode = #tpu.pipeline_mode<synchronous>, transform_indices = @transform_9, window_bounds = array<i64: 1, 32>}, {transform_indices = @transform_10, window_bounds = array<i64: 1>}, {pipeline_mode = #tpu.pipeline_mode<synchronous>, transform_indices = @transform_11, window_bounds = array<i64: 2, 16>}]} {
    %c0_i32 = arith.constant 0 : i32
    %0 = arith.cmpi eq, %arg0, %c0_i32 : i32
    %1 = arith.extui %0 : i1 to i32
    %c0_i32_0 = arith.constant 0 : i32
    %2 = arith.cmpi ne, %1, %c0_i32_0 : i32
    scf.if %2 {
      %c0_46 = arith.constant 0 : index
      %c0_47 = arith.constant 0 : index
      %c0_48 = arith.constant 0 : index
      %109 = vector.load %arg1[%c0_46, %c0_47, %c0_48] : memref<2x16x4xf32, #tpu.memory_space<vmem>>, vector<2x16x4xf32>
      %110 = vector.shape_cast %109 : vector<2x16x4xf32> to vector<32x4xf32>
      %111 = arith.truncf %110 : vector<32x4xf32> to vector<32x4xbf16>
      %c0_49 = arith.constant 0 : index
      %c0_50 = arith.constant 0 : index
      %112 = vector.load %arg2[%c0_49, %c0_50] : memref<4x32xbf16, #tpu.memory_space<vmem>>, vector<4x32xbf16>
      %cst_51 = arith.constant dense<0.000000e+00> : vector<32x32xf32>
      %113 = tpu.matmul %111, %112, %cst_51 {dimension_numbers = #tpu.dot_dimension_numbers<[1], [0], [0], [1], [0, 0, 1, 1], [], []>} : vector<32x4xbf16>, vector<4x32xbf16>, vector<32x32xf32> -> vector<32x32xf32>
      %114 = vector.shape_cast %113 : vector<32x32xf32> to vector<2x16x32xf32>
      %c0_52 = arith.constant 0 : index
      %c0_53 = arith.constant 0 : index
      %115 = vector.load %arg3[%c0_52, %c0_53] : memref<1x32xf32, #tpu.memory_space<vmem>>, vector<1x32xf32>
      %116 = vector.shape_cast %115 : vector<1x32xf32> to vector<1x1x32xf32>
      %117 = vector.broadcast %116 : vector<1x1x32xf32> to vector<2x16x32xf32>
      %118 = arith.addf %114, %117 : vector<2x16x32xf32>
      %c0_54 = arith.constant 0 : index
      %c0_55 = arith.constant 0 : index
      %c0_56 = arith.constant 0 : index
      %119 = vector.load %arg13[%c0_54, %c0_55, %c0_56] : memref<2x16x32xf32, #tpu.memory_space<vmem>>, vector<2x16x32xf32>
      tpu.vector_store %arg13[%c0_54, %c0_55, %c0_56], %118 {strides = array<i32>} : memref<2x16x32xf32, #tpu.memory_space<vmem>>, vector<2x16x32xf32>,
    } else {
    }
    %c0 = arith.constant 0 : index
    %c0_1 = arith.constant 0 : index
    %c0_2 = arith.constant 0 : index
    %3 = vector.load %arg13[%c0, %c0_1, %c0_2] : memref<2x16x32xf32, #tpu.memory_space<vmem>>, vector<2x16x32xf32>
    %c0_3 = arith.constant 0 : index
    %c0_4 = arith.constant 0 : index
    %c0_5 = arith.constant 0 : index
    %4 = vector.load %arg4[%c0_3, %c0_4, %c0_5] : memref<1x32x32xbf16, #tpu.memory_space<vmem>>, vector<1x32x32xbf16>
    %5 = vector.shape_cast %4 : vector<1x32x32xbf16> to vector<32x32xbf16>
    %c0_6 = arith.constant 0 : index
    %c0_7 = arith.constant 0 : index
    %c0_8 = arith.constant 0 : index
    %6 = vector.load %arg5[%c0_6, %c0_7, %c0_8] : memref<1x1x32xf32, #tpu.memory_space<vmem>>, vector<1x1x32xf32>
    %7 = vector.shape_cast %6 : vector<1x1x32xf32> to vector<1x32xf32>
    %c0_9 = arith.constant 0 : index
    %c0_10 = arith.constant 0 : index
    %c0_11 = arith.constant 0 : index
    %8 = vector.load %arg6[%c0_9, %c0_10, %c0_11] : memref<1x1x32xf32, #tpu.memory_space<vmem>>, vector<1x1x32xf32>
    %9 = vector.shape_cast %8 : vector<1x1x32xf32> to vector<1x32xf32>
    %10 = vector.shape_cast %3 : vector<2x16x32xf32> to vector<32x32xf32>
    %11 = arith.truncf %10 : vector<32x32xf32> to vector<32x32xbf16>
    %cst = arith.constant dense<0.000000e+00> : vector<32x32xf32>
    %12 = tpu.matmul %11, %5, %cst {dimension_numbers = #tpu.dot_dimension_numbers<[1], [0], [0], [1], [0, 0, 1, 1], [], []>} : vector<32x32xbf16>, vector<32x32xbf16>, vector<32x32xf32> -> vector<32x32xf32>
    %13 = vector.shape_cast %12 : vector<32x32xf32> to vector<2x16x32xf32>
    %cst_12 = arith.constant dense<0.000000e+00> : vector<2x32xf32>
    %14 = vector.multi_reduction <add>, %13, %cst_12 [1] : vector<2x16x32xf32> to vector<2x32xf32>
    %15 = vector.shape_cast %14 : vector<2x32xf32> to vector<2x1x32xf32>
    %cst_13 = arith.constant 1.600000e+01 : f32
    %16 = vector.broadcast %cst_13 : f32 to vector<2x1x32xf32>
    %17 = arith.divf %15, %16 : vector<2x1x32xf32>
    %18 = arith.mulf %13, %13 : vector<2x16x32xf32>
    %cst_14 = arith.constant dense<0.000000e+00> : vector<2x32xf32>
    %19 = vector.multi_reduction <add>, %18, %cst_14 [1] : vector<2x16x32xf32> to vector<2x32xf32>
    %20 = vector.shape_cast %19 : vector<2x32xf32> to vector<2x1x32xf32>
    %cst_15 = arith.constant 1.600000e+01 : f32
    %21 = vector.broadcast %cst_15 : f32 to vector<2x1x32xf32>
    %22 = arith.divf %20, %21 : vector<2x1x32xf32>
    %23 = arith.mulf %17, %17 : vector<2x1x32xf32>
    %24 = arith.subf %22, %23 : vector<2x1x32xf32>
    %cst_16 = arith.constant 0.000000e+00 : f32
    %25 = vector.broadcast %cst_16 : f32 to vector<2x1x32xf32>
    %26 = arith.maximumf %24, %25 : vector<2x1x32xf32>
    %cst_17 = arith.constant 1.000000e-03 : f32
    %27 = vector.broadcast %cst_17 : f32 to vector<2x1x32xf32>
    %28 = arith.addf %26, %27 : vector<2x1x32xf32>
    %29 = math.rsqrt %28 : vector<2x1x32xf32>
    %30 = arith.mulf %29, %29 : vector<2x1x32xf32>
    %31 = arith.mulf %26, %30 : vector<2x1x32xf32>
    %cst_18 = arith.constant dense<0.000000e+00> : vector<1x32xf32>
    %32 = vector.multi_reduction <add>, %31, %cst_18 [0] : vector<2x1x32xf32> to vector<1x32xf32>
    %33 = vector.shape_cast %32 : vector<1x32xf32> to vector<1x1x32xf32>
    %cst_19 = arith.constant 2.000000e+00 : f32
    %34 = vector.broadcast %cst_19 : f32 to vector<1x1x32xf32>
    %35 = arith.divf %33, %34 : vector<1x1x32xf32>
    %36 = vector.shape_cast %7 : vector<1x32xf32> to vector<1x1x32xf32>
    %37 = vector.broadcast %36 : vector<1x1x32xf32> to vector<2x1x32xf32>
    %38 = arith.mulf %37, %29 : vector<2x1x32xf32>
    %cst_20 = arith.constant 9.99999974E-6 : f32
    %39 = vector.broadcast %cst_20 : f32 to vector<1x1x32xf32>
    %40 = arith.addf %35, %39 : vector<1x1x32xf32>
    %41 = math.rsqrt %40 : vector<1x1x32xf32>
    %42 = vector.broadcast %41 : vector<1x1x32xf32> to vector<2x1x32xf32>
    %43 = arith.mulf %38, %42 : vector<2x1x32xf32>
    %44 = arith.mulf %17, %43 : vector<2x1x32xf32>
    %45 = vector.shape_cast %9 : vector<1x32xf32> to vector<1x1x32xf32>
    %46 = vector.broadcast %45 : vector<1x1x32xf32> to vector<2x1x32xf32>
    %47 = arith.subf %46, %44 : vector<2x1x32xf32>
    %48 = vector.broadcast %43 : vector<2x1x32xf32> to vector<2x16x32xf32>
    %49 = arith.mulf %13, %48 : vector<2x16x32xf32>
    %50 = vector.broadcast %47 : vector<2x1x32xf32> to vector<2x16x32xf32>
    %51 = arith.addf %49, %50 : vector<2x16x32xf32>
    %cst_21 = arith.constant 0.000000e+00 : f32
    %52 = vector.broadcast %cst_21 : f32 to vector<2x16x32xf32>
    %53 = arith.maximumf %51, %52 : vector<2x16x32xf32>
    %c0_22 = arith.constant 0 : index
    %c0_23 = arith.constant 0 : index
    %c0_24 = arith.constant 0 : index
    %54 = vector.load %arg7[%c0_22, %c0_23, %c0_24] : memref<1x32x32xbf16, #tpu.memory_space<vmem>>, vector<1x32x32xbf16>
    %55 = vector.shape_cast %54 : vector<1x32x32xbf16> to vector<32x32xbf16>
    %c0_25 = arith.constant 0 : index
    %c0_26 = arith.constant 0 : index
    %c0_27 = arith.constant 0 : index
    %56 = vector.load %arg8[%c0_25, %c0_26, %c0_27] : memref<1x1x32xf32, #tpu.memory_space<vmem>>, vector<1x1x32xf32>
    %57 = vector.shape_cast %56 : vector<1x1x32xf32> to vector<1x32xf32>
    %c0_28 = arith.constant 0 : index
    %c0_29 = arith.constant 0 : index
    %c0_30 = arith.constant 0 : index
    %58 = vector.load %arg9[%c0_28, %c0_29, %c0_30] : memref<1x1x32xf32, #tpu.memory_space<vmem>>, vector<1x1x32xf32>
    %59 = vector.shape_cast %58 : vector<1x1x32xf32> to vector<1x32xf32>
    %60 = vector.shape_cast %53 : vector<2x16x32xf32> to vector<32x32xf32>
    %61 = arith.truncf %60 : vector<32x32xf32> to vector<32x32xbf16>
    %cst_31 = arith.constant dense<0.000000e+00> : vector<32x32xf32>
    %62 = tpu.matmul %61, %55, %cst_31 {dimension_numbers = #tpu.dot_dimension_numbers<[1], [0], [0], [1], [0, 0, 1, 1], [], []>} : vector<32x32xbf16>, vector<32x32xbf16>, vector<32x32xf32> -> vector<32x32xf32>
    %63 = vector.shape_cast %62 : vector<32x32xf32> to vector<2x16x32xf32>
    %cst_32 = arith.constant dense<0.000000e+00> : vector<2x32xf32>
    %64 = vector.multi_reduction <add>, %63, %cst_32 [1] : vector<2x16x32xf32> to vector<2x32xf32>
    %65 = vector.shape_cast %64 : vector<2x32xf32> to vector<2x1x32xf32>
    %cst_33 = arith.constant 1.600000e+01 : f32
    %66 = vector.broadcast %cst_33 : f32 to vector<2x1x32xf32>
    %67 = arith.divf %65, %66 : vector<2x1x32xf32>
    %68 = arith.mulf %63, %63 : vector<2x16x32xf32>
    %cst_34 = arith.constant dense<0.000000e+00> : vector<2x32xf32>
    %69 = vector.multi_reduction <add>, %68, %cst_34 [1] : vector<2x16x32xf32> to vector<2x32xf32>
    %70 = vector.shape_cast %69 : vector<2x32xf32> to vector<2x1x32xf32>
    %cst_35 = arith.constant 1.600000e+01 : f32
    %71 = vector.broadcast %cst_35 : f32 to vector<2x1x32xf32>
    %72 = arith.divf %70, %71 : vector<2x1x32xf32>
    %73 = arith.mulf %67, %67 : vector<2x1x32xf32>
    %74 = arith.subf %72, %73 : vector<2x1x32xf32>
    %cst_36 = arith.constant 0.000000e+00 : f32
    %75 = vector.broadcast %cst_36 : f32 to vector<2x1x32xf32>
    %76 = arith.maximumf %74, %75 : vector<2x1x32xf32>
    %cst_37 = arith.constant 1.000000e-03 : f32
    %77 = vector.broadcast %cst_37 : f32 to vector<2x1x32xf32>
    %78 = arith.addf %76, %77 : vector<2x1x32xf32>
    %79 = math.rsqrt %78 : vector<2x1x32xf32>
    %80 = arith.mulf %79, %79 : vector<2x1x32xf32>
    %81 = arith.mulf %76, %80 : vector<2x1x32xf32>
    %cst_38 = arith.constant dense<0.000000e+00> : vector<1x32xf32>
    %82 = vector.multi_reduction <add>, %81, %cst_38 [0] : vector<2x1x32xf32> to vector<1x32xf32>
    %83 = vector.shape_cast %82 : vector<1x32xf32> to vector<1x1x32xf32>
    %cst_39 = arith.constant 2.000000e+00 : f32
    %84 = vector.broadcast %cst_39 : f32 to vector<1x1x32xf32>
    %85 = arith.divf %83, %84 : vector<1x1x32xf32>
    %86 = vector.shape_cast %57 : vector<1x32xf32> to vector<1x1x32xf32>
    %87 = vector.broadcast %86 : vector<1x1x32xf32> to vector<2x1x32xf32>
    %88 = arith.mulf %87, %79 : vector<2x1x32xf32>
    %cst_40 = arith.constant 9.99999974E-6 : f32
    %89 = vector.broadcast %cst_40 : f32 to vector<1x1x32xf32>
    %90 = arith.addf %85, %89 : vector<1x1x32xf32>
    %91 = math.rsqrt %90 : vector<1x1x32xf32>
    %92 = vector.broadcast %91 : vector<1x1x32xf32> to vector<2x1x32xf32>
    %93 = arith.mulf %88, %92 : vector<2x1x32xf32>
    %94 = arith.mulf %67, %93 : vector<2x1x32xf32>
    %95 = vector.shape_cast %59 : vector<1x32xf32> to vector<1x1x32xf32>
    %96 = vector.broadcast %95 : vector<1x1x32xf32> to vector<2x1x32xf32>
    %97 = arith.subf %96, %94 : vector<2x1x32xf32>
    %98 = vector.broadcast %93 : vector<2x1x32xf32> to vector<2x16x32xf32>
    %99 = arith.mulf %63, %98 : vector<2x16x32xf32>
    %100 = vector.broadcast %97 : vector<2x1x32xf32> to vector<2x16x32xf32>
    %101 = arith.addf %99, %100 : vector<2x16x32xf32>
    %cst_41 = arith.constant 0.000000e+00 : f32
    %102 = vector.broadcast %cst_41 : f32 to vector<2x16x32xf32>
    %103 = arith.maximumf %101, %102 : vector<2x16x32xf32>
    %104 = arith.addf %103, %3 : vector<2x16x32xf32>
    %c0_42 = arith.constant 0 : index
    %c0_43 = arith.constant 0 : index
    %c0_44 = arith.constant 0 : index
    %105 = vector.load %arg13[%c0_42, %c0_43, %c0_44] : memref<2x16x32xf32, #tpu.memory_space<vmem>>, vector<2x16x32xf32>
    tpu.vector_store %arg13[%c0_42, %c0_43, %c0_44], %104 {strides = array<i32>} : memref<2x16x32xf32, #tpu.memory_space<vmem>>, vector<2x16x32xf32>,
    %c11_i32 = arith.constant 11 : i32
    %106 = arith.cmpi eq, %arg0, %c11_i32 : i32
    %107 = arith.extui %106 : i1 to i32
    %c0_i32_45 = arith.constant 0 : i32
    %108 = arith.cmpi ne, %107, %c0_i32_45 : i32
    scf.if %108 {
      %c0_46 = arith.constant 0 : index
      %c0_47 = arith.constant 0 : index
      %109 = vector.load %arg10[%c0_46, %c0_47] : memref<1x32xf32, #tpu.memory_space<vmem>>, vector<1x32xf32>
      %110 = vector.shape_cast %109 : vector<1x32xf32> to vector<1x1x32xf32>
      %111 = vector.broadcast %110 : vector<1x1x32xf32> to vector<2x16x32xf32>
      %112 = arith.mulf %104, %111 : vector<2x16x32xf32>
      %cst_48 = arith.constant dense<0.000000e+00> : vector<2x16xf32>
      %113 = vector.multi_reduction <add>, %112, %cst_48 [2] : vector<2x16x32xf32> to vector<2x16xf32>
      %c0_49 = arith.constant 0 : index
      %114 = memref.load %arg11[%c0_49] : memref<1xf32, #tpu.memory_space<smem>>
      %115 = vector.broadcast %114 : f32 to vector<2x16xf32>
      %116 = arith.addf %113, %115 : vector<2x16xf32>
      %c0_50 = arith.constant 0 : index
      %c0_51 = arith.constant 0 : index
      %117 = vector.load %arg12[%c0_50, %c0_51] : memref<2x16xf32, #tpu.memory_space<vmem>>, vector<2x16xf32>
      tpu.vector_store %arg12[%c0_50, %c0_51], %116 {strides = array<i32>} : memref<2x16xf32, #tpu.memory_space<vmem>>, vector<2x16xf32>,
    } else {
    }
    return
  }
  func.func @transform_0(%arg0: i32) -> (i32, i32, i32) {
    %c0_i32 = arith.constant 0 : i32
    %c0_i32_0 = arith.constant 0 : i32
    %c0_i32_1 = arith.constant 0 : i32
    %c0_i32_2 = arith.constant 0 : i32
    return %c0_i32, %c0_i32_0, %c0_i32_1 : i32, i32, i32
  }
  func.func @transform_1(%arg0: i32) -> (i32, i32) {
    %c0_i32 = arith.constant 0 : i32
    %c0_i32_0 = arith.constant 0 : i32
    %c0_i32_1 = arith.constant 0 : i32
    return %c0_i32, %c0_i32_0 : i32, i32
  }
  func.func @transform_2(%arg0: i32) -> (i32, i32) {
    %c0_i32 = arith.constant 0 : i32
    %c0_i32_0 = arith.constant 0 : i32
    %c0_i32_1 = arith.constant 0 : i32
    return %c0_i32, %c0_i32_0 : i32, i32
  }
  func.func @transform_3(%arg0: i32) -> (i32, i32, i32) {
    %c0_i32 = arith.constant 0 : i32
    %c0_i32_0 = arith.constant 0 : i32
    %c0_i32_1 = arith.constant 0 : i32
    return %arg0, %c0_i32, %c0_i32_0 : i32, i32, i32
  }
  func.func @transform_4(%arg0: i32) -> (i32, i32, i32) {
    %c0_i32 = arith.constant 0 : i32
    %c0_i32_0 = arith.constant 0 : i32
    %c0_i32_1 = arith.constant 0 : i32
    return %arg0, %c0_i32, %c0_i32_0 : i32, i32, i32
  }
  func.func @transform_5(%arg0: i32) -> (i32, i32, i32) {
    %c0_i32 = arith.constant 0 : i32
    %c0_i32_0 = arith.constant 0 : i32
    %c0_i32_1 = arith.constant 0 : i32
    return %arg0, %c0_i32, %c0_i32_0 : i32, i32, i32
  }
  func.func @transform_6(%arg0: i32) -> (i32, i32, i32) {
    %c0_i32 = arith.constant 0 : i32
    %c0_i32_0 = arith.constant 0 : i32
    %c0_i32_1 = arith.constant 0 : i32
    return %arg0, %c0_i32, %c0_i32_0 : i32, i32, i32
  }
  func.func @transform_7(%arg0: i32) -> (i32, i32, i32) {
    %c0_i32 = arith.constant 0 : i32
    %c0_i32_0 = arith.constant 0 : i32
    %c0_i32_1 = arith.constant 0 : i32
    return %arg0, %c0_i32, %c0_i32_0 : i32, i32, i32
  }
  func.func @transform_8(%arg0: i32) -> (i32, i32, i32) {
    %c0_i32 = arith.constant 0 : i32
    %c0_i32_0 = arith.constant 0 : i32
    %c0_i32_1 = arith.constant 0 : i32
    return %arg0, %c0_i32, %c0_i32_0 : i32, i32, i32
  }
  func.func @transform_9(%arg0: i32) -> (i32, i32) {
    %c0_i32 = arith.constant 0 : i32
    %c0_i32_0 = arith.constant 0 : i32
    %c0_i32_1 = arith.constant 0 : i32
    return %c0_i32, %c0_i32_0 : i32, i32
  }
  func.func @transform_10(%arg0: i32) -> i32 {
    %c0_i32 = arith.constant 0 : i32
    %c0_i32_0 = arith.constant 0 : i32
    return %c0_i32 : i32
  }
  func.func @transform_11(%arg0: i32) -> (i32, i32) {
    %c0_i32 = arith.constant 0 : i32
    %c0_i32_0 = arith.constant 0 : i32
    %c0_i32_1 = arith.constant 0 : i32
    return %c0_i32, %c0_i32_0 : i32, i32
  }
}

</mosaic_0001>

<bundles_post_ra>
// kernel: tpu_custom_call.1
= control target key start
LH: loop header
LB: loop body
LE: loop exit
PB: predicated region body
PF: predicated region fallthrough
CT: control target
= control target key end

     0   :  { %s1898_s0 = inlined_call_operand.vmem [shape: f32[2,16,4], index: 0, kind: input, shape index: {}]   ;;  %s1899_s1 = inlined_call_operand.hbm [shape: bf16[4,32], index: 1, kind: input, shape index: {}]   ;;  %s1900_s2 = inlined_call_operand.vmem [shape: f32[1,32], index: 2, kind: input, shape index: {}]   ;;  %s1901_s3 = inlined_call_operand.hbm [shape: bf16[12,32,32], index: 3, kind: input, shape index: {}]   ;;  %s1902_s4 = inlined_call_operand.vmem [shape: f32[12,1,32], index: 4, kind: input, shape index: {}]   ;;  %s1903_s5 = inlined_call_operand.vmem [shape: f32[12,1,32], index: 5, kind: input, shape index: {}]   ;;  %s1904_s6 = inlined_call_operand.hbm [shape: bf16[12,32,32], index: 6, kind: input, shape index: {}]   ;;  %s1905_s7 = inlined_call_operand.vmem [shape: f32[12,1,32], index: 7, kind: input, shape index: {}]   ;;  %s1906_s8 = inlined_call_operand.vmem [shape: f32[12,1,32], index: 8, kind: input, shape index: {}]   ;;  %s1907_s9 = inlined_call_operand.vmem [shape: f32[1,32], index: 9, kind: input, shape index: {}]   ;;  %s1908_s10 = inlined_call_operand.<no memory space> [shape: f32[1], index: 10, kind: input, shape index: {}]   ;;  %s1909_s11 = inlined_call_operand.hbm [shape: f32[2,16], index: 11, kind: output, shape index: {}]  }
   0x1   :  { %16 = sst [smem:[#allocation3]] %s1908_s10 }
   0x2   :  { %17 = vsyncpa [#allocation5], 0 }
   0x3   :  { %18 = vsyncpa [#allocation8], 0 }
   0x4   :  { %20 = vsyncpa [#allocation8 + $0x1], 0 }
   0x5   :  { %21 = vsyncpa [#allocation6], 0  ;;  %s1525_s19 = smov 0   ;;  %s1527_s20 = smov 0  }
   0x6   :  { %s1529_s21 = smov 0   ;;  %s1531_s22 = smov 0  }
   0x7 LB: > { %s1546_s10 = sadd.s32 1, %s1454_s22   ;;  %s97_s23 = sadd.s32 1, %s1450_s21  ;;  %s1454_s22 = sphi %s1531_s22, %s1930_s22   ;;  %s1450_s21 = sphi %s1529_s21, %s1929_s21   ;;  %s1446_s20 = sphi %s1527_s20, %s1928_s20   ;;  %s1442_s19 = sphi %s1525_s19, %s1927_s19  }
   0x8   : > { %s94_s24 = ssub.s32 %s1454_s22, %s1546_s10  ;;  %p104_p0 = scmp.ne.s32.totalorder %s1450_s21, %s1446_s20 }
   0x9   : > { %p95_p1 = scmp.eq.s32.totalorder %s94_s24, 0  ;;  %p105_p2 = scmp.eq.s32.totalorder %s1454_s22, 0 }
   0xa   : > { %p1250_p3 = scmp.lt.s32.totalorder %s1454_s22, 12  ;;  %s350_s26 = sand.u32 1, %s1454_s22  }
   0xb   : > { %s1556_s25 = scalar_select %p95_p1, %s1450_s21, %s97_s23  }
   0xc   : > { %p106_p4 = por %p105_p2, %p104_p0  ;;  %s352_s27 = sand.u32 1, %s1450_s21  }
   0xd   : > { %s1560_s28 = sshll.u32 %s352_s27, 4  ;;  %s1190_s29 = sshll.u32 %s1454_s22, 8 }
   0xe   : > { %s1568_s13 = scalar_lea.hbm %s1901_s3, %s1190_s29  ;;  %s354_s14 = scalar_lea.vmem [#allocation7], %s1560_s28 }
   0xf   : > { %s361_s15 = sshll.u32 %s354_s14, 4  ;;  %p1571_p5 = pnand %p1250_p3, %p106_p4  ;;  %s1575_s15 = int_to_ptr.vmem [resolvable:$true] %s361_s15 }
  0x10   : > { %s1577_s17 = scalar_lea.sflag [#allocation8], %s350_s26  ;;  %s1306_s18 = scalar_lea.hbm %s1568_s13, 256 }
  0x11   : > { %p1307_p6 = scmp.ne.s32.totalorder %s1568_s13, %s1306_s18  ;;  %p1308_p7 = pneg %p1571_p5 }
  0x12   : > { %s1311_s27 = scalar_lea.hbm %s1901_s3, 3072  ;;  %p1312_p10 = scmp.lt.s32.totalorder %s1568_s13, %s1901_s3 }
  0x13   : > { %p1309_p8 = pnand %p1308_p7, %p1307_p6  ;;  %p1313_p11 = scmp.lt.s32.totalorder %s1311_s27, %s1306_s18 }
  0x15   : > { %p1310_p9 = pneg %p1309_p8  ;;  %p1314_p12 = por %p1313_p11, %p1312_p10 }
  0x17   : > { %p1315_p13 = pnand %p1314_p12, %p1310_p9 }
  0x19   : > { %1318 = shalt.err (!%p1315_p13)
}
  0x1a   : > { %s1319_s26 = scalar_lea.vmem %s1575_s15, 256  ;;  %s1456_s14 = smov [#allocation7]  }
  0x1b   : > { %p1320_p0 = scmp.ne.s32.totalorder %s1575_s15, %s1319_s26  ;;  %s1324_s23 = sshll.u32 %s1456_s14, 4  ;;  %s1325_s23 = int_to_ptr.vmem [resolvable:$false] %s1324_s23 }
  0x1c   : > { %s1326_s24 = scalar_lea.vmem %s1325_s23, 512  ;;  %p1327_p3 = scmp.lt.s32.totalorder %s1575_s15, %s1325_s23 }
  0x1d   : > { %p1322_p1 = pnand %p1320_p0, %p1308_p7  ;;  %p1328_p4 = scmp.lt.s32.totalorder %s1326_s24, %s1319_s26 }
  0x1f   : > { %p1323_p2 = pneg %p1322_p1  ;;  %p1329_p6 = por %p1328_p4, %p1327_p3 }
  0x21   : > { %p1330_p8 = pnand %p1329_p6, %p1323_p2 }
  0x23   : > { %1333 = shalt.err (!%p1330_p8)
}
  0x24   : > { %s1910_s18 = smov 64   ;;  %s1911_s27 = smov 4  }
  0x25   : > { %1245 = dma.hbm_to_vmem [thread:$0]  (!%p1571_p5), %s1568_s13, 256, %s1575_s15, %s1577_s17, %s1910_s18, %s1910_s18, %s1911_s27  }
  0x26   : > { %s1612_s26 = scalar_lea.hbm %s1904_s6, %s1190_s29  ;;  %s387_s14 = scalar_lea.vmem [#allocation9], %s1560_s28 }
  0x27   : > { %s394_s23 = sshll.u32 %s387_s14, 4  ;;  %s1616_s24 = sadd.s32 4294967295, %s1454_s22   ;;  %s1630_s23 = int_to_ptr.vmem [resolvable:$true] %s394_s23 }
  0x28   : > { %p110_p9 = scmp.ne.s32.totalorder %s1446_s20, %s1442_s19  ;;  %p1912_p10 = scmp.eq.s32.totalorder %s1616_s24, 0 }
  0x29   : > { %p1159_p11 = scmp.ge.s32.totalorder %s1454_s22, 1  ;;  %p314_p12 = scmp.lt.s32.totalorder %s1454_s22, 13 }
  0x2a   : > { %p1626_p0 = por %p1912_p10, %p110_p9  ;;  %s1459_s13 = smov [#allocation4]  }
  0x2b   : > { %p1632_p1 = pnand %p1159_p11, %p314_p12  ;;  %s1636_s15 = sshll.u32 %s1459_s13, 4  ;;  %s331_s15 = int_to_ptr.vmem [resolvable:$true] %s1636_s15 }
  0x2c   : > { %s1915_s29 = scalar_select %p1626_p0, 1, 0 }
  0x2d   : > { %s1334_s19 = scalar_lea.hbm %s1612_s26, 256  ;;  %s1339_s12 = scalar_lea.hbm %s1904_s6, 3072 }
  0x2e   : > { %p1335_p3 = scmp.ne.s32.totalorder %s1612_s26, %s1334_s19  ;;  %p1340_p8 = scmp.lt.s32.totalorder %s1612_s26, %s1904_s6 }
  0x2f   : > { %p1341_p9 = scmp.lt.s32.totalorder %s1339_s12, %s1334_s19 }
  0x30   : > { %p1337_p4 = pnand %p1335_p3, %p1308_p7 }
  0x31   : > { %p1342_p11 = por %p1341_p9, %p1340_p8 }
  0x32   : > { %p1338_p6 = pneg %p1337_p4 }
  0x34   : > { %p1343_p12 = pnand %p1342_p11, %p1338_p6 }
  0x36   : > { %1346 = shalt.err (!%p1343_p12)
}
  0x37   : > { %s1347_s13 = scalar_lea.vmem %s1630_s23, 256  ;;  %s1460_s22 = smov [#allocation9]  }
  0x38   : > { %p1348_p13 = scmp.ne.s32.totalorder %s1630_s23, %s1347_s13  ;;  %s1352_s30 = sshll.u32 %s1460_s22, 4  ;;  %s1353_s30 = int_to_ptr.vmem [resolvable:$false] %s1352_s30 }
  0x39   : > { %s1354_s27 = scalar_lea.vmem %s1353_s30, 512  ;;  %p1355_p2 = scmp.lt.s32.totalorder %s1630_s23, %s1353_s30 }
  0x3a   : > { %p1350_p3 = pnand %p1348_p13, %p1308_p7  ;;  %p1356_p10 = scmp.lt.s32.totalorder %s1354_s27, %s1347_s13 }
  0x3c   : > { %p1351_p4 = pneg %p1350_p3  ;;  %p1357_p0 = por %p1356_p10, %p1355_p2 }
  0x3e   : > { %p1358_p8 = pnand %p1357_p0, %p1351_p4 }
  0x40   : > { %1361 = shalt.err (!%p1358_p8)
}
  0x41   : > { %s1917_s18 = smov 4   ;;  %s1918_s19 = smov 64  }
  0x42   : > { %1248 = dma.hbm_to_vmem [thread:$0]  (!%p1571_p5), %s1612_s26, 256, %s1630_s23, %s1577_s17, %s1918_s19, %s1918_s19, %s1917_s18  }
  0x43   : > { %p1919_p7 = scmp.eq.s32.totalorder %s1616_s24, 0  ;;  %p1920_p13 = pneg %p1632_p1 }
  0x44   : > { %s1373_s27 = scalar_lea.vmem %s331_s15, 32  ;;  %p1381_p11 = scmp.lt.s32.totalorder %s331_s15, %s331_s15 }
  0x45   : > { %p1239_p6 = pnand %p1920_p13, %p1919_p7  ;;  %p1374_p0 = scmp.ne.s32.totalorder %s331_s15, %s1373_s27 }
  0x46   : > { %p1382_p12 = scmp.lt.s32.totalorder %s1373_s27, %s1373_s27 }
  0x47   : > { %p1364_p10 = pneg %p1239_p6 }
  0x48   : > { %p1383_p3 = por %p1382_p12, %p1381_p11 }
  0x49   : > { %p1376_p2 = pnand %p1374_p0, %p1364_p10 }
  0x4b   : > { %p1377_p9 = pneg %p1376_p2 }
  0x4d   : > { %p1384_p4 = pnand %p1383_p3, %p1377_p9 }
  0x4f   : > { %1387 = shalt.err (!%p1384_p4)
}
  0x50   : > { %1241 = dma.hbm_to_vmem [thread:$0]  (!%p1239_p6), %s1899_s1, 32, %s331_s15, [#allocation5]  }
  0x51   : > { %418 = sbr.rel (%p1632_p1) target bundleno = 1042 (0x412), region = 64  ;;  %p1921_p5 = scmp.eq.s32.totalorder (!%p1632_p1), %s1616_s24, 0 }
  0x56   : > { %1429 = dma.done.wait (%p1921_p5), [#allocation5], 32   ;;  %p1922_p8 = pmov %p1921_p5 }
  0x57   : > { %s424_s17 = sand.u32 1, %s1616_s24   ;;  %s426_s26 = sand.u32 1, %s1446_s20  }
  0x58   : > { %1431 = vsyncadd (%p1922_p8), [#allocation5], 4294967264  ;;  %s1683_s23 = sshll.u32 %s426_s26, 4  ;;  %s425_s14 = scalar_lea.sflag [#allocation8], %s424_s17 }
  0x59   : > { %p1923_p7 = scmp.ne.s32.totalorder %s1915_s29, 0 }
  0x5b   : > { %1433 = dma.done.wait (%p1923_p7), %s425_s14, 512  }
  0x5c   : > { %1435 = vsyncadd (%p1923_p7), %s425_s14, 4294966784  ;;  %p488_p1 = scmp.lt.s32.totalorder %s1616_s24, 11  ;;  %s437_s13 = scalar_lea.vmem [#allocation9], %s1683_s23 }
  0x5d   : > { %p1924_p13 = scmp.ne.s32.totalorder %s1616_s24, 0 }
  0x5e   : > { %s1692_s28 = scalar_select %p488_p1, %s1616_s24, 11 }
  0x5f   : > { %504 = sbr.rel (%p1924_p13) target bundleno = 307 (0x133), region = 80 }
  0x60   : > { %s490_s30 = scalar_lea.vmem %s1902_s4, %s1692_s28  ;;  %s493_s27 = scalar_lea.vmem %s1903_s5, %s1692_s28 }
  0x61   : > { %s496_s12 = scalar_lea.vmem %s1905_s7, %s1692_s28  ;;  %s499_s14 = scalar_lea.vmem %s1906_s8, %s1692_s28 }
  0x64   : > { %v511_v0 = vld [vmem:[#allocation4] sm:$0x3]  ;;  %vm519_vm0 = vcmask 1041408   ;;  %v506_v2 = vld [vmem:[%s1898_s0 + $0x8] sm:$0xff]  ;;  %vm512_vm1 = vcmask 31744   ;;  %v507_v5 = vld [vmem:[%s1898_s0 + $0x10] sm:$0xff] }
  0x65   : > { %v505_v1 = vld [vmem:[%s1898_s0] sm:$0xff]  ;;  %1225 = vmatprep.subr.msk.bf16.mxu0 %vm519_vm0, %v511_v0  ;;  %v521_v3 = vsel %vm519_vm0, %v511_v0, 0  ;;  %v508_v6 = vld [vmem:[%s1898_s0 + $0x18] sm:$0xff]  ;;  %vm583_vm2 = vcmask 261120  }
  0x66   : > { %v509_v4 = vpack.c.bf16 %v506_v2, %v505_v1  ;;  %1204 = vmatpush3.bf16.msra.mxu0 %v521_v3  ;;  %v510_v7 = vpack.c.bf16 %v508_v6, %v507_v5  ;;  %v1175_v8 = vld [vmem:[%s1900_s2] ss:$0 sm:$0xff] }
  0x68   : > { %1205 = vmatprep.mubr.msk.bf16.mxu0 %vm512_vm1, %v509_v4 }
  0x69   : > { %1206 = vmatmul.mubr.msk.bf16.vlgmr.msra.gmra.mxu0 %vm512_vm1, %v510_v7 }
 0x129   : > { %v1207_v9 = vpop.f32.mrf.mxu0 }
 0x12a   : > { %v581_v10 = vadd.f32 %v1207_v9, %v1175_v8 }
 0x12b   : > { %v557_v11 = vpop.f32.mrf.mxu0 }
 0x12c   : > { %586 = vst.msk [vmem:[#allocation2 + $0x10] sm:$0xff] %vm583_vm2, %v581_v10  ;;  %v579_v12 = vadd.f32 %v1175_v8, %v557_v11 }
 0x12d   : > { %v1208_v13 = vpop.f32.mrf.mxu0 }
 0x12e   : > { %584 = vst.msk [vmem:[#allocation2] sm:$0xff] %vm583_vm2, %v579_v12  ;;  %v582_v14 = vadd.f32 %v1208_v13, %v1175_v8 }
 0x12f   : > { %v560_v15 = vpop.f32.mrf.mxu0 }
 0x130   : > { %587 = vst.msk [vmem:[#allocation2 + $0x18] sm:$0xff] %vm583_vm2, %v582_v14  ;;  %v580_v16 = vadd.f32 %v1175_v8, %v560_v15 }
 0x132   : > { %585 = vst.msk [vmem:[#allocation2 + $0x8] sm:$0xff] %vm583_vm2, %v580_v16 }
 0x133 PF: > { %s1925_s18 = scalar_lea.vmem [#allocation7], %s1683_s23  ;;  %vm612_vm3 = vcmask 261120   ;;  %v1736_v21 = vld [vmem:[#allocation2 + $0x10] sm:$0xff]  ;;  %p1184_p6 = scmp.ne.s32.totalorder %s1616_s24, 11 }
 0x134   : > { %v1290_v17 = vld [vmem:[%s1925_s18 + $0x8] sm:$0xff]   ;;  %s1926_s19 = smov %s1925_s18  ;;  %v1293_v26 = vld [vmem:[%s437_s13] sm:$0xff]  }
 0x135   : > { %v1291_v18 = vld [vmem:[%s1926_s19] sm:$0xff]   ;;  %1209 = vmatprep.subr.bf16.mxu0 %v1290_v17 }
 0x136   : > { %v1732_v19 = vld [vmem:[#allocation2] sm:$0xff]  ;;  %1210 = vmatpush3.bf16.msra.mxu0 %v1290_v17 }
 0x137   : > { %v1740_v23 = vld [vmem:[#allocation2 + $0x18] sm:$0xff]  ;;  %1211 = vmatprep.subr.bf16.mxu0 %v1291_v18 }
 0x138   : > { %v599_v24 = vpack.c.bf16 %v1740_v23, %v1736_v21  ;;  %v1292_v25 = vld [vmem:[%s437_s13 + $0x8] sm:$0xff]  }
 0x139   : > { %v1734_v20 = vld [vmem:[#allocation2 + $0x8] sm:$0xff]  ;;  %1217 = vmatprep.subr.bf16.mxu1 %v1292_v25 }
 0x13a   : > { %v598_v22 = vpack.c.bf16 %v1734_v20, %v1732_v19  ;;  %1212 = vmatpush3.bf16.msra.mxu0 %v1291_v18  ;;  %1218 = vmatpush3.bf16.msra.mxu1 %v1292_v25 }
 0x13b   : > { %1219 = vmatprep.subr.bf16.mxu1 %v1293_v26 }
 0x13c   : > { %1213 = vmatprep.mubr.msk.bf16.mxu0 %vm612_vm3, %v598_v22 }
 0x13d   : > { %1214 = vmatmul.mubr.msk.bf16.vlgmr.msra.gmra.mxu0 %vm612_vm3, %v599_v24 }
 0x13e   : > { %1220 = vmatpush3.bf16.msra.mxu1 %v1293_v26 }
 0x1fd   : > { %v1750_v27 = vpop.f32.mrf.mxu0 }
 0x1fe   : > { %v691_v28 = vmul.f32 %v1750_v27, %v1750_v27  ;;  %v677_v31 = vsel %vm612_vm3, %v1750_v27, 0.0 }
 0x1ff   : > { %v1754_v29 = vpop.f32.mrf.mxu0 }
 0x200   : > { %v689_v32 = vmul.f32 %v1754_v29, %v1754_v29  ;;  %v702_v35 = vsel %vm612_vm3, %v691_v28, 0.0  ;;  %v668_v38 = vsel %vm612_vm3, %v1754_v29, 0.0 }
 0x201   : > { %v1756_v30 = vpop.f32.mrf.mxu0 }
 0x202   : > { %v678_v33 = vsel %vm612_vm3, %v1756_v30, 0.0  ;;  %v692_v34 = vmul.f32 %v1756_v30, %v1756_v30  ;;  %v693_v45 = vsel %vm612_vm3, %v689_v32, 0.0 }
 0x203   : > { %v679_v36 = vadd.f32 %v678_v33, %v677_v31  ;;  %v1767_v37 = vpop.f32.mrf.mxu0 }
 0x204   : > { %v703_v39 = vsel %vm612_vm3, %v692_v34, 0.0  ;;  %v669_v40 = vsel %vm612_vm3, %v1767_v37, 0.0  ;;  %v690_v41 = vmul.f32 %v1767_v37, %v1767_v37 }
 0x205   : > { %v680_v42 = vrot.slane %v679_v36, 4  ;;  %v704_v43 = vadd.f32 %v703_v39, %v702_v35  ;;  %v670_v44 = vadd.f32 %v669_v40, %v668_v38  ;;  %v744_v38 = vlaneseq  ;;  %v596_v40 = vld [vmem:[%s490_s30] sm:$0x1] }
 0x206   : > { %v694_v46 = vsel %vm612_vm3, %v690_v41, 0.0 }
 0x207   : > { %v681_v47 = vadd.f32 %v680_v42, %v679_v36  ;;  %v705_v48 = vrot.slane %v704_v43, 4  ;;  %v671_v49 = vrot.slane %v670_v44, 4  ;;  %v695_v50 = vadd.f32 %v694_v46, %v693_v45 }
 0x208   : > { %v1781_v39 = vshrl.u32 %v744_v38, 7 }
 0x209   : > { %v682_v51 = vrot.slane %v681_v47, 2  ;;  %v706_v52 = vadd.f32 %v705_v48, %v704_v43  ;;  %v672_v53 = vadd.f32 %v671_v49, %v670_v44  ;;  %v696_v54 = vrot.slane %v695_v50, 4 }
 0x20a   : > { %v1789_v43 = vsub.s32 0, %v1781_v39 }
 0x20b   : > { %v683_v55 = vadd.f32 %v682_v51, %v681_v47  ;;  %v707_v56 = vrot.slane %v706_v52, 2  ;;  %v673_v57 = vrot.slane %v672_v53, 2  ;;  %v697_v58 = vadd.f32 %v696_v54, %v695_v50  ;;  %v597_v47 = vld [vmem:[%s493_s27] sm:$0x1] }
 0x20d   : > { %v684_v59 = vrot.slane %v683_v55, 1  ;;  %v708_v60 = vadd.f32 %v707_v56, %v706_v52  ;;  %v674_v61 = vadd.f32 %v673_v57, %v672_v53  ;;  %v698_v62 = vrot.slane %v697_v58, 2 }
 0x20f   : > { %v685_v63 = vadd.f32 %v684_v59, %v683_v55  ;;  %v709_v0 = vrot.slane %v708_v60, 1  ;;  %v675_v1 = vrot.slane %v674_v61, 1  ;;  %v699_v2 = vadd.f32 %v698_v62, %v697_v58 }
 0x211   : > { %v688_v3 = vmul.f32 0.0625, %v685_v63  ;;  %v710_v4 = vadd.f32 %v709_v0, %v708_v60  ;;  %v676_v5 = vadd.f32 %v675_v1, %v674_v61  ;;  %v700_v6 = vrot.slane %v699_v2, 1 }
 0x213   : > { %v712_v7 = vmul.f32 0.0625, %v710_v4  ;;  %v714_v8 = vmul.f32 %v688_v3, %v688_v3  ;;  %v687_v9 = vmul.f32 0.0625, %v676_v5  ;;  %v701_v10 = vadd.f32 %v700_v6, %v699_v2 }
 0x215   : > { %v716_v11 = vsub.f32 %v712_v7, %v714_v8  ;;  %v711_v12 = vmul.f32 0.0625, %v701_v10  ;;  %v713_v13 = vmul.f32 %v687_v9, %v687_v9 }
 0x217   : > { %v718_v14 = vmax.f32 %v716_v11, 0.0  ;;  %v715_v15 = vsub.f32 %v711_v12, %v713_v13 }
 0x219   : > { %v720_v16 = vadd.f32 0.001, %v718_v14  ;;  %v717_v17 = vmax.f32 %v715_v15, 0.0 }
 0x21b   : > { %1294 = vrsqrt.f32 %v720_v16  ;;  %v719_v18 = vadd.f32 0.001, %v717_v17 }
 0x21d   : > { %1296 = vrsqrt.f32 %v719_v18 }
 0x228   : > { %v1295_v22 = vpop.eup %1294 }
 0x229   : > { %v724_v24 = vmul.f32 %v1295_v22, %v1295_v22  ;;  %v733_v42 = vmul.f32 %v1295_v22, %v596_v40 }
 0x22a   : > { %v1297_v25 = vpop.eup %1296 }
 0x22b   : > { %v726_v26 = vmul.f32 %v724_v24, %v718_v14  ;;  %v723_v28 = vmul.f32 %v1297_v25, %v1297_v25  ;;  %v732_v41 = vmul.f32 %v1297_v25, %v596_v40 }
 0x22d   : > { %v725_v31 = vmul.f32 %v723_v28, %v717_v17  ;;  %v728_v32 = vsel %vm612_vm3, %v726_v26, 0.0 }
 0x22f   : > { %v727_v33 = vsel %vm612_vm3, %v725_v31, 0.0 }
 0x230   : > { %v729_v34 = vadd.f32 %v728_v32, %v727_v33 }
 0x232   : > { %v731_v35 = vmul.f32 0.5, %v729_v34 }
 0x234   : > { %v734_v36 = vadd.f32 1e-05, %v731_v35 }
 0x236   : > { %1298 = vrsqrt.f32 %v734_v36 }
 0x243   : > { %v1299_v44 = vpop.eup %1298 }
 0x244   : > { %v736_v45 = vmul.f32 %v1299_v44, %v732_v41  ;;  %v737_v46 = vmul.f32 %v1299_v44, %v733_v42 }
 0x246   : > { %v738_v48 = vmul.f32 %v736_v45, %v687_v9  ;;  %v739_v49 = vmul.f32 %v737_v46, %v688_v3  ;;  %v747_v50 = vrot.slane %v736_v45, %v1789_v43  ;;  %v751_v51 = vrot.slane %v737_v46, %v1789_v43 }
 0x248   : > { %v740_v52 = vsub.f32 %v597_v47, %v738_v48  ;;  %v741_v53 = vsub.f32 %v597_v47, %v739_v49  ;;  %v754_v54 = vmul.f32 %v747_v50, %v1754_v29  ;;  %v755_v55 = vmul.f32 %v747_v50, %v1767_v37 }
 0x249   : > { %v756_v58 = vmul.f32 %v1750_v27, %v751_v51  ;;  %v757_v59 = vmul.f32 %v1756_v30, %v751_v51 }
 0x24a   : > { %v763_v56 = vrot.slane %v740_v52, %v1789_v43  ;;  %v767_v57 = vrot.slane %v741_v53, %v1789_v43 }
 0x24c   : > { %v771_v60 = vadd.f32 %v763_v56, %v755_v55  ;;  %v770_v61 = vadd.f32 %v763_v56, %v754_v54  ;;  %v772_v62 = vadd.f32 %v767_v57, %v756_v58  ;;  %v773_v63 = vadd.f32 %v767_v57, %v757_v59 }
 0x24e   : > { %v774_v0 = vmax.f32 %v770_v61, 0.0  ;;  %v775_v1 = vmax.f32 %v771_v60, 0.0  ;;  %v776_v2 = vmax.f32 %v772_v62, 0.0  ;;  %v777_v3 = vmax.f32 %v773_v63, 0.0 }
 0x250   : > { %v784_v4 = vpack.c.bf16 %v775_v1, %v774_v0  ;;  %v785_v29 = vpack.c.bf16 %v777_v3, %v776_v2 }
 0x252   : > { %1221 = vmatprep.mubr.msk.bf16.mxu1 %vm612_vm3, %v784_v4 }
 0x253   : > { %1222 = vmatmul.mubr.msk.bf16.vlgmr.msra.gmra.mxu1 %vm612_vm3, %v785_v29 }
 0x313   : > { %v1806_v37 = vpop.f32.mrf.mxu1 }
 0x314   : > { %v875_v27 = vmul.f32 %v1806_v37, %v1806_v37  ;;  %v862_v6 = vsel %vm612_vm3, %v1806_v37, 0.0 }
 0x315   : > { %v1810_v30 = vpop.f32.mrf.mxu1 }
 0x316   : > { %v873_v7 = vmul.f32 %v1810_v30, %v1810_v30  ;;  %v886_v10 = vsel %vm612_vm3, %v875_v27, 0.0  ;;  %v853_v13 = vsel %vm612_vm3, %v1810_v30, 0.0 }
 0x317   : > { %v1812_v5 = vpop.f32.mrf.mxu1 }
 0x318   : > { %v863_v8 = vsel %vm612_vm3, %v1812_v5, 0.0  ;;  %v876_v9 = vmul.f32 %v1812_v5, %v1812_v5  ;;  %v877_v24 = vsel %vm612_vm3, %v873_v7, 0.0 }
 0x319   : > { %v864_v11 = vadd.f32 %v863_v8, %v862_v6  ;;  %v1823_v12 = vpop.f32.mrf.mxu1 }
 0x31a   : > { %v887_v14 = vsel %vm612_vm3, %v876_v9, 0.0  ;;  %v854_v15 = vsel %vm612_vm3, %v1823_v12, 0.0  ;;  %v874_v16 = vmul.f32 %v1823_v12, %v1823_v12 }
 0x31b   : > { %v865_v17 = vrot.slane %v864_v11, 4  ;;  %v888_v18 = vadd.f32 %v887_v14, %v886_v10  ;;  %v855_v22 = vadd.f32 %v854_v15, %v853_v13 }
 0x31c   : > { %v878_v25 = vsel %vm612_vm3, %v874_v16, 0.0  ;;  %v782_v16 = vld [vmem:[%s496_s12] sm:$0x1] }
 0x31d   : > { %v866_v26 = vadd.f32 %v865_v17, %v864_v11  ;;  %v889_v28 = vrot.slane %v888_v18, 4  ;;  %v856_v31 = vrot.slane %v855_v22, 4  ;;  %v879_v32 = vadd.f32 %v878_v25, %v877_v24 }
 0x31f   : > { %v867_v33 = vrot.slane %v866_v26, 2  ;;  %v890_v34 = vadd.f32 %v889_v28, %v888_v18  ;;  %v857_v35 = vadd.f32 %v856_v31, %v855_v22  ;;  %v880_v36 = vrot.slane %v879_v32, 4 }
 0x321   : > { %v868_v40 = vadd.f32 %v867_v33, %v866_v26  ;;  %v891_v41 = vrot.slane %v890_v34, 2  ;;  %v858_v42 = vrot.slane %v857_v35, 2  ;;  %v881_v44 = vadd.f32 %v880_v36, %v879_v32  ;;  %v783_v26 = vld [vmem:[%s499_s14] sm:$0x1]  ;;  %s996_s14 = sld [smem:[#allocation3]] (!%p1184_p6) }
 0x323   : > { %v869_v45 = vrot.slane %v868_v40, 1  ;;  %v892_v46 = vadd.f32 %v891_v41, %v890_v34  ;;  %v859_v47 = vadd.f32 %v858_v42, %v857_v35  ;;  %v882_v48 = vrot.slane %v881_v44, 2 }
 0x325   : > { %v870_v49 = vadd.f32 %v869_v45, %v868_v40  ;;  %v893_v50 = vrot.slane %v892_v46, 1  ;;  %v860_v51 = vrot.slane %v859_v47, 1  ;;  %v883_v52 = vadd.f32 %v882_v48, %v881_v44 }
 0x327   : > { %v872_v53 = vmul.f32 0.0625, %v870_v49  ;;  %v894_v54 = vadd.f32 %v893_v50, %v892_v46  ;;  %v861_v55 = vadd.f32 %v860_v51, %v859_v47  ;;  %v884_v56 = vrot.slane %v883_v52, 1 }
 0x329   : > { %v896_v57 = vmul.f32 0.0625, %v894_v54  ;;  %v898_v58 = vmul.f32 %v872_v53, %v872_v53  ;;  %v871_v59 = vmul.f32 0.0625, %v861_v55  ;;  %v885_v60 = vadd.f32 %v884_v56, %v883_v52 }
 0x32b   : > { %v900_v61 = vsub.f32 %v896_v57, %v898_v58  ;;  %v895_v62 = vmul.f32 0.0625, %v885_v60  ;;  %v897_v63 = vmul.f32 %v871_v59, %v871_v59 }
 0x32d   : > { %v902_v0 = vmax.f32 %v900_v61, 0.0  ;;  %v899_v1 = vsub.f32 %v895_v62, %v897_v63 }
 0x32f   : > { %v904_v2 = vadd.f32 0.001, %v902_v0  ;;  %v901_v3 = vmax.f32 %v899_v1, 0.0 }
 0x331   : > { %1300 = vrsqrt.f32 %v904_v2  ;;  %v903_v4 = vadd.f32 0.001, %v901_v3 }
 0x333   : > { %1302 = vrsqrt.f32 %v903_v4 }
 0x33e   : > { %v1301_v29 = vpop.eup %1300 }
 0x33f   : > { %v908_v27 = vmul.f32 %v1301_v29, %v1301_v29  ;;  %v916_v18 = vmul.f32 %v1301_v29, %v782_v16 }
 0x340   : > { %v1303_v6 = vpop.eup %1302 }
 0x341   : > { %v910_v7 = vmul.f32 %v908_v27, %v902_v0  ;;  %v907_v8 = vmul.f32 %v1303_v6, %v1303_v6  ;;  %v915_v17 = vmul.f32 %v1303_v6, %v782_v16 }
 0x343   : > { %v909_v9 = vmul.f32 %v907_v8, %v901_v3  ;;  %v912_v10 = vsel %vm612_vm3, %v910_v7, 0.0 }
 0x345   : > { %v911_v11 = vsel %vm612_vm3, %v909_v9, 0.0 }
 0x346   : > { %v913_v13 = vadd.f32 %v912_v10, %v911_v11 }
 0x348   : > { %v914_v14 = vmul.f32 0.5, %v913_v13 }
 0x34a   : > { %v917_v15 = vadd.f32 1e-05, %v914_v14 }
 0x34c   : > { %1304 = vrsqrt.f32 %v917_v15 }
 0x359   : > { %v1305_v22 = vpop.eup %1304 }
 0x35a   : > { %v919_v24 = vmul.f32 %v1305_v22, %v915_v17  ;;  %v920_v25 = vmul.f32 %v1305_v22, %v916_v18 }
 0x35c   : > { %v921_v28 = vmul.f32 %v919_v24, %v871_v59  ;;  %v922_v31 = vmul.f32 %v920_v25, %v872_v53  ;;  %v930_v32 = vrot.slane %v919_v24, %v1789_v43  ;;  %v934_v33 = vrot.slane %v920_v25, %v1789_v43 }
 0x35e   : > { %v923_v34 = vsub.f32 %v783_v26, %v921_v28  ;;  %v924_v35 = vsub.f32 %v783_v26, %v922_v31  ;;  %v937_v36 = vmul.f32 %v930_v32, %v1810_v30  ;;  %v938_v40 = vmul.f32 %v930_v32, %v1823_v12 }
 0x35f   : > { %v939_v41 = vmul.f32 %v1806_v37, %v934_v33  ;;  %v940_v42 = vmul.f32 %v1812_v5, %v934_v33 }
 0x360   : > { %v946_v44 = vrot.slane %v923_v34, %v1789_v43  ;;  %v950_v45 = vrot.slane %v924_v35, %v1789_v43 }
 0x362   : > { %v953_v46 = vadd.f32 %v946_v44, %v937_v36  ;;  %v954_v47 = vadd.f32 %v946_v44, %v938_v40  ;;  %v955_v48 = vadd.f32 %v950_v45, %v939_v41  ;;  %v956_v49 = vadd.f32 %v950_v45, %v940_v42 }
 0x364   : > { %v957_v50 = vmax.f32 %v953_v46, 0.0  ;;  %v958_v51 = vmax.f32 %v954_v47, 0.0  ;;  %v959_v52 = vmax.f32 %v955_v48, 0.0  ;;  %v960_v53 = vmax.f32 %v956_v49, 0.0 }
 0x365   : > { %972 = sbr.rel (%p1184_p6) target bundleno = 1027 (0x403), region = 84 }
 0x366   : > { %v961_v30 = vadd.f32 %v957_v50, %v1732_v19  ;;  %v962_v12 = vadd.f32 %v958_v51, %v1734_v20  ;;  %v963_v37 = vadd.f32 %v959_v52, %v1736_v21  ;;  %v964_v5 = vadd.f32 %v960_v53, %v1740_v23 }
 0x368   : > { %965 = vst.msk [vmem:[#allocation2] sm:$0xff] %vm612_vm3, %v961_v30  ;;  %966 = vst.msk [vmem:[#allocation2 + $0x8] sm:$0xff] %vm612_vm3, %v962_v12 }
 0x369   : > { %967 = vst.msk [vmem:[#allocation2 + $0x10] sm:$0xff] %vm612_vm3, %v963_v37  ;;  %968 = vst.msk [vmem:[#allocation2 + $0x18] sm:$0xff] %vm612_vm3, %v964_v5 }
 0x36a   : > { %v1185_v19 = vld [vmem:[%s1907_s9] ss:$0 sm:$0xff]  ;;  %v1007_v58 = vand.u32 127, %v744_v38  ;;  %v997_v60 = vstv %s996_s14  ;;  %vm1017_vm4 = vcmask 130112   ;;  %vm1028_vm5 = vcmask 1041409  }
 0x36b   : > { %v982_v20 = vmul.f32 %v1185_v19, %v963_v37  ;;  %v980_v43 = vmul.f32 %v1185_v19, %v961_v30  ;;  %v983_v21 = vmul.f32 %v1185_v19, %v964_v5  ;;  %v981_v54 = vmul.f32 %v1185_v19, %v962_v12 }
 0x36c   : > { %v1012_v59 = vadd.s32 4294967288, %v1007_v58  ;;  %v1010_v63 = vsub.s32 %v1007_v58, %v1781_v39  ;;  %vm1031_vm6 = vcmask 123904  }
 0x36d   : > { %v990_v23 = vsel %vm612_vm3, %v982_v20, 0.0  ;;  %v984_v55 = vsel %vm612_vm3, %v980_v43, 0.0  ;;  %v993_v56 = vsel %vm612_vm3, %v983_v21, 0.0  ;;  %v987_v57 = vsel %vm612_vm3, %v981_v54, 0.0 }
 0x36e   : > { %991 = vadd.xlane.f32.xlu1 %v990_v23  ;;  %985 = vadd.xlane.f32.xlu0 %v984_v55  ;;  %v1015_v2 = vsub.s32 %v1012_v59, %v1781_v39 }
 0x372   : > { %994 = vadd.xlane.f32.xlu1 %v993_v56  ;;  %988 = vadd.xlane.f32.xlu0 %v987_v57 }
 0x3f7   : > { %v992_v61 = vpop.xlane.xlu1 %991  ;;  %v986_v62 = vpop.xlane.xlu0 %985 }
 0x3f8   : > { %v1000_v0 = vadd.f32 %v997_v60, %v992_v61  ;;  %v998_v1 = vadd.f32 %v997_v60, %v986_v62 }
 0x3fa   : > { %v1022_v6 = vrot.slane %v1000_v0, %v1010_v63  ;;  %v1011_v7 = vrot.slane %v998_v1, %v1010_v63 }
 0x3fb   : > { %v995_v3 = vpop.xlane.xlu1 %994  ;;  %v989_v4 = vpop.xlane.xlu0 %988 }
 0x3fc   : > { %v1001_v29 = vadd.f32 %v997_v60, %v995_v3  ;;  %v999_v27 = vadd.f32 %v997_v60, %v989_v4 }
 0x3fe   : > { %v1026_v8 = vrot.slane %v1001_v29, %v1015_v2  ;;  %v1016_v38 = vrot.slane %v999_v27, %v1015_v2 }
 0x400   : > { %v1027_v9 = vsel %vm1017_vm4, %v1026_v8, %v1022_v6  ;;  %v1018_v10 = vsel %vm1017_vm4, %v1016_v38, %v1011_v7 }
 0x401   : > { %v1029_v11 = vsel %vm1028_vm5, %v1027_v9, %v1018_v10 }
 0x402   : > { %1032 = vst.msk [vmem:[#allocation10] sm:$0x3] %vm1031_vm6, %v1029_v11 }
 0x403 PF: > { %p1252_p10 = scmp.eq.s32.totalorder %s1616_s24, 11  ;;  %s1461_s15 = smov [#allocation10]  }
 0x404   : > { %s1040_s22 = sshll.u32 %s1461_s15, 4  ;;  %s1041_s22 = int_to_ptr.vmem [resolvable:$true] %s1040_s22 }
 0x405   : > { %s1388_s18 = scalar_lea.vmem %s1041_s22, 32  ;;  %p1395_p11 = scmp.lt.s32.totalorder %s1041_s22, %s1041_s22 }
 0x406   : > { %p1389_p0 = scmp.ne.s32.totalorder %s1041_s22, %s1388_s18  ;;  %p1396_p12 = scmp.lt.s32.totalorder %s1388_s18, %s1388_s18 }
 0x408   : > { %p1390_p2 = pnand %p1389_p0, %p1252_p10  ;;  %p1397_p3 = por %p1396_p12, %p1395_p11 }
 0x40a   : > { %p1391_p9 = pneg %p1390_p2 }
 0x40c   : > { %p1398_p4 = pnand %p1397_p3, %p1391_p9 }
 0x40e   : > { %1401 = shalt.err (!%p1398_p4)
}
 0x40f   : > { %1235 = dma.vmem_to_hbm [thread:$0]  (%p1252_p10), %s1041_s22, 32, %s1909_s11, [#allocation6]  }
 0x410   : > { %1437 = dma.done.wait (%p1252_p10), [#allocation6], 32  }
 0x411   : > { %1439 = vsyncadd (%p1252_p10), [#allocation6], 4294967264 }
 0x412 PF: > { %p24_p5 = scmp.ge.s32.totalorder %s1546_s10, 14   ;;  %s1927_s19 = smov %s1446_s20 }
 0x413   : > { %s1928_s20 = smov %s1450_s21  ;;  %s1929_s21 = smov %s1556_s25 }
 0x414   : > { %s1930_s22 = smov %s1546_s10  ;;  %26 = sbr.rel (!%p24_p5) target bundleno = 7 (0x7), region = 137 }
 0x419   :  { %1053 = vsyncpa [#allocation5], 1 }
 0x41a   :  { %1055 = vsyncpa [#allocation5 + $0x1], 1 }
 0x41b   :  { %1056 = vsyncpa [#allocation8], 1 }
 0x41c   :  { %1058 = vsyncpa [#allocation8 + $0x1], 1 }
 0x41d   :  { %1059 = vsyncpa [#allocation6], 1 }
 0x41e   :  { %1061 = vsyncpa [#allocation6 + $0x1], 1 }

</bundles_post_ra>
